<compile_context>
chip_gen: v6e
topology: v6e:2x2x1
jax: 0.10.0
libtpu: 0.0.40
codegen_flags: <defaults>
</compile_context>

<pallas_src>
import jax
import jax.numpy as jnp
from jax.experimental import pallas as pl
from jax.experimental.pallas import tpu as pltpu


def _round_up(v, m):
    return ((v + m - 1) // m) * m


# ----------------------------- Pallas kernel ---------------------------------

def fused_gcn2_kernel(alpha_ref, adj_ref, x_ref, w1_ref, b1_ref, w2_ref, b2_ref,
                      out_ref, hw2_ref):
    """Fused 2-layer GCN:  out = PReLU(A @ (PReLU(A @ (X@W1) + b1) @ W2) + b2).

    Grid axis 0 walks row tiles of the output.  The layer-1 pass and the H@W2
    feature transform are computed once (i == 0) into the resident VMEM scratch
    `hw2_ref`; every grid step then only does one row-tile MXU aggregation.
    """
    i = pl.program_id(0)
    alpha = alpha_ref[0]

    @pl.when(i == 0)
    def _():
        # Layer 1: feature transform + aggregation, f32 accumulation on the MXU.
        xw1 = jnp.dot(x_ref[...], w1_ref[...], preferred_element_type=jnp.float32)
        h = jnp.dot(adj_ref[...], xw1.astype(jnp.bfloat16),
                    preferred_element_type=jnp.float32) + b1_ref[...]
        h = jnp.where(h > 0, h, alpha * h)                       # PReLU (scalar alpha)
        # Layer-2 feature transform, kept resident for all row tiles.
        hw2_ref[...] = jnp.dot(h.astype(jnp.bfloat16), w2_ref[...],
                               preferred_element_type=jnp.float32
                               ).astype(jnp.bfloat16)

    # Layer-2 aggregation for this row tile.
    tm = out_ref.shape[0]
    row0 = pl.multiple_of(i * tm, tm)
    a_rows = adj_ref[pl.ds(row0, tm), :]
    o = jnp.dot(a_rows, hw2_ref[...], preferred_element_type=jnp.float32) + b2_ref[...]
    out_ref[...] = jnp.where(o > 0, o, alpha * o)                # PReLU


# ------------------------------ wrapper ---------------------------------------

def fused_encoder(adj, x, w1, b1, w2, b2, alpha):
    """Pad to lane-dense bf16 operands and run the fused 2-layer kernel."""
    n, f_in = x.shape
    h_dim = w1.shape[1]
    f_out = w2.shape[1]

    n_p = _round_up(n, 128)
    tm = 256 if (n_p % 256 == 0) else 128            # 256-row tiles when divisible (v6e/v7x MXU)
    fin_p = _round_up(f_in, 128)
    h_p = _round_up(h_dim, 128)
    fo_p = _round_up(f_out, 128)

    # Zero-padded, lane-dense, bf16 operands (f32 accumulation happens in-kernel).
    adj_p = jnp.zeros((n_p, n_p), jnp.bfloat16).at[:n, :n].set(adj.astype(jnp.bfloat16))
    x_p = jnp.zeros((n_p, fin_p), jnp.bfloat16).at[:n, :f_in].set(x.astype(jnp.bfloat16))
    w1_p = jnp.zeros((fin_p, h_p), jnp.bfloat16).at[:f_in, :h_dim].set(w1.astype(jnp.bfloat16))
    b1_p = jnp.zeros((1, h_p), jnp.float32).at[:, :h_dim].set(b1)
    w2_p = jnp.zeros((h_p, fo_p), jnp.bfloat16).at[:h_dim, :f_out].set(w2.astype(jnp.bfloat16))
    b2_p = jnp.zeros((1, fo_p), jnp.float32).at[:, :f_out].set(b2)

    grid = (n_p // tm,)

    flops = 2 * (n_p * fin_p * h_p + n_p * n_p * h_p
                 + n_p * h_p * fo_p + n_p * n_p * fo_p)
    bytes_accessed = (2 * (adj_p.size + x_p.size + w1_p.size + w2_p.size)   # bf16
                      + 4 * (b1_p.size + b2_p.size)                          # f32
                      + 4 * n_p * fo_p)                                      # f32 output

    vmem_est = (2 * 2 * (adj_p.size + x_p.size + w1_p.size + w2_p.size)     # bf16, x2 buffers
                + 2 * 4 * (b1_p.size + b2_p.size)
                + 2 * 4 * tm * fo_p                                          # output tiles
                + 2 * n_p * fo_p                                             # hw2 scratch (bf16)
                + (4 << 20))                                                 # headroom
    vmem_limit = int(min(max(vmem_est, 16 << 20), 48 << 20))                 # safe on v7x 64 MiB

    out_p = pl.pallas_call(
        fused_gcn2_kernel,
        out_shape=jax.ShapeDtypeStruct((n_p, fo_p), jnp.float32),
        grid=grid,
        in_specs=[
            pl.BlockSpec(memory_space=pltpu.SMEM),               # alpha  (1,)
            pl.BlockSpec((n_p, n_p), lambda i: (0, 0)),          # A_hat  (DMA'd once, resident)
            pl.BlockSpec((n_p, fin_p), lambda i: (0, 0)),        # X      (resident)
            pl.BlockSpec((fin_p, h_p), lambda i: (0, 0)),        # W1
            pl.BlockSpec((1, h_p), lambda i: (0, 0)),            # b1
            pl.BlockSpec((h_p, fo_p), lambda i: (0, 0)),         # W2
            pl.BlockSpec((1, fo_p), lambda i: (0, 0)),           # b2
        ],
        out_specs=pl.BlockSpec((tm, fo_p), lambda i: (i, 0)),
        scratch_shapes=[pltpu.VMEM((n_p, fo_p), jnp.bfloat16)],  # resident H @ W2
        compiler_params=pltpu.CompilerParams(
            # row tiles reuse the scratch written at i == 0 -> must stay sequential
            dimension_semantics=("arbitrary",),
            vmem_limit_bytes=vmem_limit),
        cost_estimate=pl.CostEstimate(flops=int(flops), transcendentals=0,
                                      bytes_accessed=int(bytes_accessed)),
    )(alpha, adj_p, x_p, w1_p, b1_p, w2_p, b2_p)

    return out_p[:n, :f_out]


# ------------------------------ plain-JAX glue --------------------------------

def gcn_norm_adj(edge_index, num_nodes):
    """Dense D^-1/2 (A + I) D^-1/2 with PyG gcn_norm semantics.

    Duplicate edges accumulate (scatter-add), existing self loops are replaced by
    weight-1 self loops (add_remaining_self_loops with fill_value=1).
    """
    src = edge_index[0]
    dst = edge_index[1]
    eye = jnp.eye(num_nodes, dtype=jnp.float32)
    a = jnp.zeros((num_nodes, num_nodes), jnp.float32)
    a = a.at[dst, src].add(1.0)          # accumulate duplicate edges (PyG parity)
    a = a * (1.0 - eye) + eye            # drop existing self loops, add weight-1 loops
    deg = jnp.sum(a, axis=1)             # in-degree incl. self loop (>= 1)
    d_inv_sqrt = jax.lax.rsqrt(deg)
    return a * d_inv_sqrt[:, None] * d_inv_sqrt[None, :]


def glorot(key, shape):
    fan_in, fan_out = shape
    limit = jnp.sqrt(6.0 / (fan_in + fan_out))
    return jax.random.uniform(key, shape, jnp.float32, -limit, limit)


def init_encoder_params(key, in_channels, out_channels, k=2):
    """Deterministic parameter init matching EncoderMod(skip=False) shapes."""
    assert k >= 2
    dims = [in_channels] + [2 * out_channels] * (k - 1) + [out_channels]
    params = []
    for i in range(k):
        key, wk = jax.random.split(key)
        w = glorot(wk, (dims[i], dims[i + 1]))
        b = jnp.zeros((1, dims[i + 1]), jnp.float32)
        params.append((w, b))
    alpha = jnp.array([0.25], jnp.float32)  # nn.PReLU default init
    return params, alpha


def encoder_mod_forward(x, edge_index, params, alpha):
    """EncoderMod.forward, skip=False path, k=2, eval mode (dropout = identity)."""
    # TODO(synk): training-mode dropout (p=0.5) omitted (eval semantics); could be
    #             added in-kernel via pltpu.prng_seed / pltpu.prng_random_bits.
    assert len(params) == 2, "fused kernel implements the default k=2 encoder"
    adj = gcn_norm_adj(edge_index, x.shape[0])
    (w1, b1), (w2, b2) = params
    return fused_encoder(adj, x, w1, b1, w2, b2, alpha)


# ---------------------------------- main ---------------------------------------

if __name__ == "__main__":
    key = jax.random.PRNGKey(0)

    # Small synthetic graph consistent with a node-classification encoder.
    num_nodes = 32
    in_channels = 16
    out_channels = 8
    num_edges = 64
    k = 2

    key, kx, ke, kp = jax.random.split(key, 4)
    x = jax.random.normal(kx, (num_nodes, in_channels), jnp.float32)
    ei = jax.random.randint(ke, (2, num_edges), 0, num_nodes, jnp.int32)
    # Make the graph undirected (typical for citation graphs).
    edge_index = jnp.concatenate([ei, ei[::-1]], axis=1)

    params, alpha = init_encoder_params(kp, in_channels, out_channels, k=k)

    out = encoder_mod_forward(x, edge_index, params, alpha)
    out = jax.block_until_ready(out)

    assert out.shape == (num_nodes, out_channels), out.shape
    assert out.dtype == jnp.float32
    assert bool(jnp.all(jnp.isfinite(out)))
    print("KERNEL_OK")
</pallas_src>

<mosaic_0001>
module attributes {stable_mosaic.version = 11 : i64} {
  func.func @fused_gcn2_kernel(%arg0: i32, %arg1: memref<1xf32, #tpu.memory_space<smem>>, %arg2: memref<128x128xbf16, #tpu.memory_space<vmem>>, %arg3: memref<128x128xbf16, #tpu.memory_space<vmem>>, %arg4: memref<128x128xbf16, #tpu.memory_space<vmem>>, %arg5: memref<1x128xf32, #tpu.memory_space<vmem>>, %arg6: memref<128x128xbf16, #tpu.memory_space<vmem>>, %arg7: memref<1x128xf32, #tpu.memory_space<vmem>>, %arg8: memref<128x128xf32, #tpu.memory_space<vmem>>, %arg9: memref<128x128xbf16, #tpu.memory_space<vmem>>) attributes {dimension_semantics = [#tpu.dimension_semantics<arbitrary>], iteration_bounds = array<i64: 1>, scalar_prefetch = 0 : i64, scratch_operands = 1 : i64, tpu.core_type = #tpu.core_type<tc>, window_params = [{transform_indices = @transform_0, window_bounds = array<i64: 1>}, {pipeline_mode = #tpu.pipeline_mode<synchronous>, transform_indices = @transform_1, window_bounds = array<i64: 128, 128>}, {pipeline_mode = #tpu.pipeline_mode<synchronous>, transform_indices = @transform_2, window_bounds = array<i64: 128, 128>}, {pipeline_mode = #tpu.pipeline_mode<synchronous>, transform_indices = @transform_3, window_bounds = array<i64: 128, 128>}, {pipeline_mode = #tpu.pipeline_mode<synchronous>, transform_indices = @transform_4, window_bounds = array<i64: 1, 128>}, {pipeline_mode = #tpu.pipeline_mode<synchronous>, transform_indices = @transform_5, window_bounds = array<i64: 128, 128>}, {pipeline_mode = #tpu.pipeline_mode<synchronous>, transform_indices = @transform_6, window_bounds = array<i64: 1, 128>}, {transform_indices = @transform_7, window_bounds = array<i64: 128, 128>}]} {
    %c0 = arith.constant 0 : index
    %0 = memref.load %arg1[%c0] : memref<1xf32, #tpu.memory_space<smem>>
    %c0_i32 = arith.constant 0 : i32
    %1 = arith.cmpi eq, %arg0, %c0_i32 : i32
    %2 = arith.extui %1 : i1 to i32
    %c0_i32_0 = arith.constant 0 : i32
    %3 = arith.cmpi ne, %2, %c0_i32_0 : i32
    scf.if %3 {
      %c0_9 = arith.constant 0 : index
      %c0_10 = arith.constant 0 : index
      %19 = vector.load %arg3[%c0_9, %c0_10] : memref<128x128xbf16, #tpu.memory_space<vmem>>, vector<128x128xbf16>
      %c0_11 = arith.constant 0 : index
      %c0_12 = arith.constant 0 : index
      %20 = vector.load %arg4[%c0_11, %c0_12] : memref<128x128xbf16, #tpu.memory_space<vmem>>, vector<128x128xbf16>
      %cst_13 = arith.constant dense<0.000000e+00> : vector<128x128xf32>
      %21 = tpu.matmul %19, %20, %cst_13 {dimension_numbers = #tpu.dot_dimension_numbers<[1], [0], [0], [1], [0, 0, 1, 1], [], []>} : vector<128x128xbf16>, vector<128x128xbf16>, vector<128x128xf32> -> vector<128x128xf32>
      %c0_14 = arith.constant 0 : index
      %c0_15 = arith.constant 0 : index
      %22 = vector.load %arg2[%c0_14, %c0_15] : memref<128x128xbf16, #tpu.memory_space<vmem>>, vector<128x128xbf16>
      %23 = arith.truncf %21 : vector<128x128xf32> to vector<128x128xbf16>
      %cst_16 = arith.constant dense<0.000000e+00> : vector<128x128xf32>
      %24 = tpu.matmul %22, %23, %cst_16 {dimension_numbers = #tpu.dot_dimension_numbers<[1], [0], [0], [1], [0, 0, 1, 1], [], []>} : vector<128x128xbf16>, vector<128x128xbf16>, vector<128x128xf32> -> vector<128x128xf32>
      %c0_17 = arith.constant 0 : index
      %c0_18 = arith.constant 0 : index
      %25 = vector.load %arg5[%c0_17, %c0_18] : memref<1x128xf32, #tpu.memory_space<vmem>>, vector<1x128xf32>
      %26 = vector.broadcast %25 : vector<1x128xf32> to vector<128x128xf32>
      %27 = arith.addf %24, %26 : vector<128x128xf32>
      %cst_19 = arith.constant 0.000000e+00 : f32
      %28 = vector.broadcast %cst_19 : f32 to vector<128x128xf32>
      %29 = arith.cmpf ogt, %27, %28 : vector<128x128xf32>
      %30 = vector.broadcast %0 : f32 to vector<128x128xf32>
      %31 = arith.mulf %30, %27 : vector<128x128xf32>
      %32 = arith.select %29, %27, %31 : vector<128x128xi1>, vector<128x128xf32>
      %33 = arith.truncf %32 : vector<128x128xf32> to vector<128x128xbf16>
      %c0_20 = arith.constant 0 : index
      %c0_21 = arith.constant 0 : index
      %34 = vector.load %arg6[%c0_20, %c0_21] : memref<128x128xbf16, #tpu.memory_space<vmem>>, vector<128x128xbf16>
      %cst_22 = arith.constant dense<0.000000e+00> : vector<128x128xf32>
      %35 = tpu.matmul %33, %34, %cst_22 {dimension_numbers = #tpu.dot_dimension_numbers<[1], [0], [0], [1], [0, 0, 1, 1], [], []>} : vector<128x128xbf16>, vector<128x128xbf16>, vector<128x128xf32> -> vector<128x128xf32>
      %36 = arith.truncf %35 : vector<128x128xf32> to vector<128x128xbf16>
      %c0_23 = arith.constant 0 : index
      %c0_24 = arith.constant 0 : index
      %37 = vector.load %arg9[%c0_23, %c0_24] : memref<128x128xbf16, #tpu.memory_space<vmem>>, vector<128x128xbf16>
      tpu.vector_store %arg9[%c0_23, %c0_24], %36 {strides = array<i32>} : memref<128x128xbf16, #tpu.memory_space<vmem>>, vector<128x128xbf16>,
    } else {
    }
    %c128_i32 = arith.constant 128 : i32
    %4 = arith.muli %arg0, %c128_i32 : i32
    %5 = tpu.assume_multiple %4, 128 : i32
    %6 = arith.index_cast %5 : i32 to index
    %c0_1 = arith.constant 0 : index
    %7 = vector.load %arg2[%6, %c0_1] : memref<128x128xbf16, #tpu.memory_space<vmem>>, vector<128x128xbf16>
    %c0_2 = arith.constant 0 : index
    %c0_3 = arith.constant 0 : index
    %8 = vector.load %arg9[%c0_2, %c0_3] : memref<128x128xbf16, #tpu.memory_space<vmem>>, vector<128x128xbf16>
    %cst = arith.constant dense<0.000000e+00> : vector<128x128xf32>
    %9 = tpu.matmul %7, %8, %cst {dimension_numbers = #tpu.dot_dimension_numbers<[1], [0], [0], [1], [0, 0, 1, 1], [], []>} : vector<128x128xbf16>, vector<128x128xbf16>, vector<128x128xf32> -> vector<128x128xf32>
    %c0_4 = arith.constant 0 : index
    %c0_5 = arith.constant 0 : index
    %10 = vector.load %arg7[%c0_4, %c0_5] : memref<1x128xf32, #tpu.memory_space<vmem>>, vector<1x128xf32>
    %11 = vector.broadcast %10 : vector<1x128xf32> to vector<128x128xf32>
    %12 = arith.addf %9, %11 : vector<128x128xf32>
    %cst_6 = arith.constant 0.000000e+00 : f32
    %13 = vector.broadcast %cst_6 : f32 to vector<128x128xf32>
    %14 = arith.cmpf ogt, %12, %13 : vector<128x128xf32>
    %15 = vector.broadcast %0 : f32 to vector<128x128xf32>
    %16 = arith.mulf %15, %12 : vector<128x128xf32>
    %17 = arith.select %14, %12, %16 : vector<128x128xi1>, vector<128x128xf32>
    %c0_7 = arith.constant 0 : index
    %c0_8 = arith.constant 0 : index
    %18 = vector.load %arg8[%c0_7, %c0_8] : memref<128x128xf32, #tpu.memory_space<vmem>>, vector<128x128xf32>
    tpu.vector_store %arg8[%c0_7, %c0_8], %17 {strides = array<i32>} : memref<128x128xf32, #tpu.memory_space<vmem>>, vector<128x128xf32>,
    return
  }
  func.func @transform_0(%arg0: i32) -> i32 {
    %c0_i32 = arith.constant 0 : i32
    %c0_i32_0 = arith.constant 0 : i32
    return %c0_i32 : i32
  }
  func.func @transform_1(%arg0: i32) -> (i32, i32) {
    %c0_i32 = arith.constant 0 : i32
    %c0_i32_0 = arith.constant 0 : i32
    %c0_i32_1 = arith.constant 0 : i32
    return %c0_i32, %c0_i32_0 : i32, i32
  }
  func.func @transform_2(%arg0: i32) -> (i32, i32) {
    %c0_i32 = arith.constant 0 : i32
    %c0_i32_0 = arith.constant 0 : i32
    %c0_i32_1 = arith.constant 0 : i32
    return %c0_i32, %c0_i32_0 : i32, i32
  }
  func.func @transform_3(%arg0: i32) -> (i32, i32) {
    %c0_i32 = arith.constant 0 : i32
    %c0_i32_0 = arith.constant 0 : i32
    %c0_i32_1 = arith.constant 0 : i32
    return %c0_i32, %c0_i32_0 : i32, i32
  }
  func.func @transform_4(%arg0: i32) -> (i32, i32) {
    %c0_i32 = arith.constant 0 : i32
    %c0_i32_0 = arith.constant 0 : i32
    %c0_i32_1 = arith.constant 0 : i32
    return %c0_i32, %c0_i32_0 : i32, i32
  }
  func.func @transform_5(%arg0: i32) -> (i32, i32) {
    %c0_i32 = arith.constant 0 : i32
    %c0_i32_0 = arith.constant 0 : i32
    %c0_i32_1 = arith.constant 0 : i32
    return %c0_i32, %c0_i32_0 : i32, i32
  }
  func.func @transform_6(%arg0: i32) -> (i32, i32) {
    %c0_i32 = arith.constant 0 : i32
    %c0_i32_0 = arith.constant 0 : i32
    %c0_i32_1 = arith.constant 0 : i32
    return %c0_i32, %c0_i32_0 : i32, i32
  }
  func.func @transform_7(%arg0: i32) -> (i32, i32) {
    %c0_i32 = arith.constant 0 : i32
    %c0_i32_0 = arith.constant 0 : i32
    return %arg0, %c0_i32 : i32, i32
  }
}

</mosaic_0001>

<bundles_post_ra>
// kernel: tpu_custom_call.1
= control target key start
LH: loop header
LB: loop body
LE: loop exit
PB: predicated region body
PF: predicated region fallthrough
CT: control target
= control target key end

     0   :  { %13 = vsyncpa [#allocation5], 0  ;;  %s1752_s0 = inlined_call_operand.<no memory space> [shape: f32[1], index: 0, kind: input, shape index: {}]   ;;  %s1753_s1 = inlined_call_operand.hbm [shape: bf16[128,128], index: 1, kind: input, shape index: {}]   ;;  %s1754_s2 = inlined_call_operand.hbm [shape: bf16[128,128], index: 2, kind: input, shape index: {}]   ;;  %s1755_s3 = inlined_call_operand.hbm [shape: bf16[128,128], index: 3, kind: input, shape index: {}]   ;;  %s1756_s4 = inlined_call_operand.vmem [shape: f32[1,128], index: 4, kind: input, shape index: {}]   ;;  %s1757_s5 = inlined_call_operand.hbm [shape: bf16[128,128], index: 5, kind: input, shape index: {}]   ;;  %s1758_s6 = inlined_call_operand.vmem [shape: f32[1,128], index: 6, kind: input, shape index: {}]   ;;  %s1759_s7 = inlined_call_operand.hbm [shape: f32[128,128], index: 7, kind: output, shape index: {}]  }
   0x1   :  { %14 = vsyncpa [#allocation8], 0 }
   0x2   :  { %15 = vsyncpa [#allocation11], 0 }
   0x3   :  { %16 = vsyncpa [#allocation6], 0  ;;  %s1597_s24 = smov [#allocation7]   ;;  %s1598_s26 = smov [#allocation4]  }
   0x4   :  { %s36_s25 = sshll.u32 %s1597_s24, 4  ;;  %s24_s27 = sshll.u32 %s1598_s26, 4  ;;  %s37_s25 = int_to_ptr.vmem [resolvable:$true] %s36_s25  ;;  %s25_s27 = int_to_ptr.vmem [resolvable:$true] %s24_s27 }
   0x5   :  { %s1497_s28 = scalar_lea.vmem %s37_s25, 1024  ;;  %p1502_p1 = scmp.lt.s32.totalorder %s37_s25, %s37_s25 }
   0x6   :  { %p1498_p0 = scmp.ne.s32.totalorder %s37_s25, %s1497_s28  ;;  %p1503_p2 = scmp.lt.s32.totalorder %s1497_s28, %s1497_s28 }
   0x8   :  { %p1504_p3 = por %p1503_p2, %p1502_p1 }
   0xa   :  { %p1505_p4 = pnand %p1504_p3, %p1498_p0 }
   0xc   :  { %1508 = shalt.err (!%p1505_p4)
}
   0xd   :  { %s1599_s29 = smov 64   ;;  %s1600_s30 = smov 4  }
   0xe   :  { %42 = dma.hbm_to_vmem [thread:$0]  %s1754_s2, 1024, %s37_s25, [#allocation8], %s1599_s29, %s1599_s29, %s1600_s30  }
   0xf   :  { %s1517_s10 = scalar_lea.vmem %s25_s27, 1024  ;;  %p1522_p6 = scmp.lt.s32.totalorder %s25_s27, %s25_s27 }
  0x10   :  { %p1518_p5 = scmp.ne.s32.totalorder %s25_s27, %s1517_s10  ;;  %p1523_p7 = scmp.lt.s32.totalorder %s1517_s10, %s1517_s10 }
  0x12   :  { %p1524_p8 = por %p1523_p7, %p1522_p6 }
  0x14   :  { %p1525_p9 = pnand %p1524_p8, %p1518_p5 }
  0x16   :  { %1528 = shalt.err (!%p1525_p9)
}
  0x17   :  { %30 = dma.hbm_to_vmem [thread:$0]  %s1753_s1, 1024, %s25_s27, [#allocation5], %s1599_s29, %s1599_s29, %s1600_s30  }
  0x18   :  { %s1601_s13 = smov [#allocation9]   ;;  %s1602_s15 = smov [#allocation10]  }
  0x19   :  { %s48_s14 = sshll.u32 %s1601_s13, 4  ;;  %s62_s16 = sshll.u32 %s1602_s15, 4  ;;  %s49_s14 = int_to_ptr.vmem [resolvable:$true] %s48_s14  ;;  %s63_s16 = int_to_ptr.vmem [resolvable:$true] %s62_s16 }
  0x1a   :  { %s1537_s2 = scalar_lea.vmem %s49_s14, 1024  ;;  %p1542_p11 = scmp.lt.s32.totalorder %s49_s14, %s49_s14 }
  0x1b   :  { %p1538_p10 = scmp.ne.s32.totalorder %s49_s14, %s1537_s2  ;;  %p1543_p12 = scmp.lt.s32.totalorder %s1537_s2, %s1537_s2 }
  0x1d   :  { %p1544_p13 = por %p1543_p12, %p1542_p11 }
  0x1f   :  { %p1545_p0 = pnand %p1544_p13, %p1538_p10 }
  0x21   :  { %1548 = shalt.err (!%p1545_p0)
}
  0x22   :  { %54 = dma.hbm_to_vmem [thread:$0]  %s1755_s3, 1024, %s49_s14, [#allocation8], %s1599_s29, %s1599_s29, %s1600_s30  }
  0x23   :  { %s1557_s1 = scalar_lea.vmem %s63_s16, 1024  ;;  %p1562_p2 = scmp.lt.s32.totalorder %s63_s16, %s63_s16 }
  0x24   :  { %p1558_p1 = scmp.ne.s32.totalorder %s63_s16, %s1557_s1  ;;  %p1563_p3 = scmp.lt.s32.totalorder %s1557_s1, %s1557_s1 }
  0x26   :  { %p1564_p4 = por %p1563_p3, %p1562_p2 }
  0x28   :  { %p1565_p5 = pnand %p1564_p4, %p1558_p1 }
  0x2a   :  { %1568 = shalt.err (!%p1565_p5)
}
  0x2b   :  { %68 = dma.hbm_to_vmem [thread:$0]  %s1757_s5, 1024, %s63_s16, [#allocation11], %s1599_s29, %s1599_s29, %s1600_s30  }
  0x2c   :  { %1589 = dma.done.wait [#allocation5], 1024  }
  0x2d   :  { %1590 = vsyncadd [#allocation5], 4294966272 }
  0x2e   :  { %1591 = dma.done.wait [#allocation8], 2048  }
  0x2f   :  { %1592 = vsyncadd [#allocation8], 4294965248 }
  0x30   :  { %1593 = dma.done.wait [#allocation11], 1024  }
  0x31   :  { %1594 = vsyncadd [#allocation11], 4294966272  ;;  %v1441_v0 = vld [vmem:[#allocation9 + $0x38] sm:$0xff]   ;;  %v1442_v1 = vld [vmem:[#allocation9 + $0x30] sm:$0xff]   ;;  %v1680_v62 = vstv %s1752_s0 }
  0x32   :  { %1304 = vmatprep.subr.bf16.mxu0 %v1441_v0  ;;  %v1443_v2 = vld [vmem:[#allocation9 + $0x28] sm:$0xff]   ;;  %v1444_v3 = vld [vmem:[#allocation9 + $0x20] sm:$0xff]   ;;  %v1445_v5 = vld [vmem:[#allocation9 + $0x18] sm:$0xff]  }
  0x33   :  { %1305 = vmatpush3.bf16.msra.mxu0 %v1441_v0  ;;  %v1449_v4 = vld [vmem:[#allocation7] sm:$0xff]   ;;  %v1446_v6 = vld [vmem:[#allocation9 + $0x10] sm:$0xff]   ;;  %v1447_v7 = vld [vmem:[#allocation9 + $0x8] sm:$0xff]  }
  0x34   :  { %1306 = vmatprep.subr.bf16.mxu0 %v1442_v1  ;;  %1320 = vmatprep.mubr.bf16.mxu0 %v1449_v4  ;;  %v1448_v8 = vld [vmem:[#allocation9] sm:$0xff]   ;;  %v1450_v9 = vld [vmem:[#allocation7 + $0x8] sm:$0xff]   ;;  %v1451_v10 = vld [vmem:[#allocation7 + $0x10] sm:$0xff]  }
  0x35   :  { %v1452_v11 = vld [vmem:[#allocation7 + $0x18] sm:$0xff]   ;;  %v1453_v12 = vld [vmem:[#allocation7 + $0x20] sm:$0xff]   ;;  %v1454_v13 = vld [vmem:[#allocation7 + $0x28] sm:$0xff]  }
  0x36   :  { %v1455_v14 = vld [vmem:[#allocation7 + $0x30] sm:$0xff]   ;;  %v1456_v15 = vld [vmem:[#allocation7 + $0x38] sm:$0xff]   ;;  %v1457_v16 = vld [vmem:[#allocation4] sm:$0xff]  }
  0x37   :  { %1307 = vmatpush3.bf16.msra.mxu0 %v1442_v1  ;;  %1352 = vmatprep.mubr.bf16.mxu1 %v1457_v16  ;;  %v1465_v17 = vld [vmem:[#allocation10 + $0x38] sm:$0xff]   ;;  %v1466_v18 = vld [vmem:[#allocation10 + $0x30] sm:$0xff]   ;;  %v1467_v19 = vld [vmem:[#allocation10 + $0x28] sm:$0xff]  }
  0x38   :  { %1308 = vmatprep.subr.bf16.mxu0 %v1443_v2  ;;  %v1468_v20 = vld [vmem:[#allocation10 + $0x20] sm:$0xff]   ;;  %v1469_v21 = vld [vmem:[#allocation10 + $0x18] sm:$0xff]   ;;  %v1458_v46 = vld [vmem:[#allocation4 + $0x8] sm:$0xff]  }
  0x39   :  { %v1459_v47 = vld [vmem:[#allocation4 + $0x10] sm:$0xff]   ;;  %v1460_v48 = vld [vmem:[#allocation4 + $0x18] sm:$0xff]   ;;  %v1461_v49 = vld [vmem:[#allocation4 + $0x20] sm:$0xff]  }
  0x3a   :  { %v1462_v50 = vld [vmem:[#allocation4 + $0x28] sm:$0xff]   ;;  %v1463_v51 = vld [vmem:[#allocation4 + $0x30] sm:$0xff]   ;;  %v1464_v52 = vld [vmem:[#allocation4 + $0x38] sm:$0xff]  }
  0x3b   :  { %1309 = vmatpush3.bf16.msra.mxu0 %v1443_v2  ;;  %v1470_v53 = vld [vmem:[#allocation10 + $0x10] sm:$0xff]   ;;  %v1471_v54 = vld [vmem:[#allocation10 + $0x8] sm:$0xff]   ;;  %v1472_v55 = vld [vmem:[#allocation10] sm:$0xff]  }
  0x3c   :  { %1310 = vmatprep.subr.bf16.mxu0 %v1444_v3  ;;  %v1673_v57 = vld [vmem:[%s1756_s4] ss:$0 sm:$0xff] }
  0x3f   :  { %1311 = vmatpush3.bf16.msra.mxu0 %v1444_v3 }
  0x40   :  { %1312 = vmatprep.subr.bf16.mxu0 %v1445_v5 }
  0x43   :  { %1313 = vmatpush3.bf16.msra.mxu0 %v1445_v5 }
  0x44   :  { %1314 = vmatprep.subr.bf16.mxu0 %v1446_v6 }
  0x47   :  { %1315 = vmatpush3.bf16.msra.mxu0 %v1446_v6 }
  0x48   :  { %1316 = vmatprep.subr.bf16.mxu0 %v1447_v7 }
  0x4b   :  { %1317 = vmatpush3.bf16.msra.mxu0 %v1447_v7 }
  0x4c   :  { %1318 = vmatprep.subr.bf16.mxu0 %v1448_v8 }
  0x4f   :  { %1319 = vmatpush3.bf16.msra.mxu0 %v1448_v8 }
  0x50   :  { %1368 = vmatprep.subr.bf16.mxu0 %v1465_v17 }
  0x52   :  { %1321 = vmatmul.mubr.bf16.vlgmr.msra.gmra.mxu0 %v1450_v9 }
  0x53   :  { %1324 = vmatprep.mubr.bf16.mxu0 %v1451_v10  ;;  %1369 = vmatpush3.bf16.msra.mxu0 %v1465_v17 }
  0x54   :  { %1370 = vmatprep.subr.bf16.mxu0 %v1466_v18 }
  0x57   :  { %1371 = vmatpush3.bf16.msra.mxu0 %v1466_v18 }
  0x58   :  { %1372 = vmatprep.subr.bf16.mxu0 %v1467_v19 }
  0x5a   :  { %1325 = vmatmul.mubr.bf16.gmra.mxu0 %v1452_v11 }
  0x5b   :  { %1328 = vmatprep.mubr.bf16.mxu0 %v1453_v12  ;;  %1373 = vmatpush3.bf16.msra.mxu0 %v1467_v19 }
  0x5c   :  { %1374 = vmatprep.subr.bf16.mxu0 %v1468_v20 }
  0x5f   :  { %1375 = vmatpush3.bf16.msra.mxu0 %v1468_v20 }
  0x60   :  { %1376 = vmatprep.subr.bf16.mxu0 %v1469_v21 }
  0x62   :  { %1329 = vmatmul.mubr.bf16.gmra.mxu0 %v1454_v13 }
  0x63   :  { %1332 = vmatprep.mubr.bf16.mxu0 %v1455_v14  ;;  %1377 = vmatpush3.bf16.msra.mxu0 %v1469_v21 }
  0x64   :  { %1378 = vmatprep.subr.bf16.mxu0 %v1470_v53 }
  0x67   :  { %1379 = vmatpush3.bf16.msra.mxu0 %v1470_v53 }
  0x68   :  { %1380 = vmatprep.subr.bf16.mxu0 %v1471_v54 }
  0x6a   :  { %1333 = vmatmul.mubr.bf16.gmra.mxu0 %v1456_v15 }
  0x6b   :  { %1381 = vmatpush3.bf16.msra.mxu0 %v1471_v54 }
  0x6c   :  { %1382 = vmatprep.subr.bf16.mxu0 %v1472_v55 }
  0x6f   :  { %1383 = vmatpush3.bf16.msra.mxu0 %v1472_v55 }
 0x112   :  { %v1322_v22 = vpop.f32.mrf.mxu0 }
 0x114   :  { %v251_v23 = vpop.f32.mrf.mxu0 }
 0x116   :  { %v1323_v24 = vpop.f32.mrf.mxu0 }
 0x117   :  { %v331_v44 = vpack.c.bf16 %v1323_v24, %v1322_v22 }
 0x118   :  { %v254_v25 = vpop.f32.mrf.mxu0 }
 0x119   :  { %v330_v45 = vpack.c.bf16 %v254_v25, %v251_v23 }
 0x11a   :  { %v1326_v26 = vpop.f32.mrf.mxu0 }
 0x11c   :  { %v267_v27 = vpop.f32.mrf.mxu0 }
 0x11e   :  { %v1327_v28 = vpop.f32.mrf.mxu0 }
 0x11f   :  { %v333_v42 = vpack.c.bf16 %v1327_v28, %v1326_v26 }
 0x120   :  { %v270_v29 = vpop.f32.mrf.mxu0 }
 0x121   :  { %v332_v43 = vpack.c.bf16 %v270_v29, %v267_v27 }
 0x122   :  { %v1330_v30 = vpop.f32.mrf.mxu0 }
 0x124   :  { %v283_v31 = vpop.f32.mrf.mxu0 }
 0x126   :  { %v1331_v32 = vpop.f32.mrf.mxu0 }
 0x127   :  { %v335_v40 = vpack.c.bf16 %v1331_v32, %v1330_v30 }
 0x128   :  { %v286_v33 = vpop.f32.mrf.mxu0 }
 0x129   :  { %v334_v41 = vpack.c.bf16 %v286_v33, %v283_v31 }
 0x12a   :  { %v1334_v34 = vpop.f32.mrf.mxu0 }
 0x12c   :  { %v299_v35 = vpop.f32.mrf.mxu0 }
 0x12e   :  { %v1335_v36 = vpop.f32.mrf.mxu0 }
 0x12f   :  { %v337_v37 = vpack.c.bf16 %v1335_v36, %v1334_v34 }
 0x130   :  { %v302_v38 = vpop.f32.mrf.mxu0 }
 0x131   :  { %v336_v39 = vpack.c.bf16 %v302_v38, %v299_v35  ;;  %1336 = vmatprep.subr.bf16.mxu1 %v337_v37 }
 0x132   :  { %1337 = vmatpush3.bf16.msra.mxu1 %v337_v37 }
 0x133   :  { %1338 = vmatprep.subr.bf16.mxu1 %v336_v39 }
 0x136   :  { %1339 = vmatpush3.bf16.msra.mxu1 %v336_v39 }
 0x137   :  { %1340 = vmatprep.subr.bf16.mxu1 %v335_v40 }
 0x13a   :  { %1341 = vmatpush3.bf16.msra.mxu1 %v335_v40 }
 0x13b   :  { %1342 = vmatprep.subr.bf16.mxu1 %v334_v41 }
 0x13e   :  { %1343 = vmatpush3.bf16.msra.mxu1 %v334_v41 }
 0x13f   :  { %1344 = vmatprep.subr.bf16.mxu1 %v333_v42 }
 0x142   :  { %1345 = vmatpush3.bf16.msra.mxu1 %v333_v42 }
 0x143   :  { %1346 = vmatprep.subr.bf16.mxu1 %v332_v43 }
 0x146   :  { %1347 = vmatpush3.bf16.msra.mxu1 %v332_v43 }
 0x147   :  { %1348 = vmatprep.subr.bf16.mxu1 %v331_v44 }
 0x14a   :  { %1349 = vmatpush3.bf16.msra.mxu1 %v331_v44 }
 0x14b   :  { %1350 = vmatprep.subr.bf16.mxu1 %v330_v45 }
 0x14e   :  { %1351 = vmatpush3.bf16.msra.mxu1 %v330_v45 }
 0x151   :  { %1353 = vmatmul.mubr.bf16.vlgmr.msra.gmra.mxu1 %v1458_v46 }
 0x152   :  { %1356 = vmatprep.mubr.bf16.mxu1 %v1459_v47 }
 0x159   :  { %1357 = vmatmul.mubr.bf16.gmra.mxu1 %v1460_v48 }
 0x15a   :  { %1360 = vmatprep.mubr.bf16.mxu1 %v1461_v49 }
 0x161   :  { %1361 = vmatmul.mubr.bf16.gmra.mxu1 %v1462_v50 }
 0x162   :  { %1364 = vmatprep.mubr.bf16.mxu1 %v1463_v51 }
 0x169   :  { %1365 = vmatmul.mubr.bf16.gmra.mxu1 %v1464_v52 }
 0x211   :  { %v1354_v56 = vpop.f32.mrf.mxu1 }
 0x212   :  { %v436_v60 = vadd.f32 %v1354_v56, %v1673_v57 }
 0x213   :  { %v427_v58 = vpop.f32.mrf.mxu1 }
 0x214   :  { %v428_v59 = vadd.f32 %v1673_v57, %v427_v58  ;;  %v509_v4 = vmul.f32 %v1680_v62, %v436_v60  ;;  %vm492_vm2 = vcmp.gt.f32.partialorder %v436_v60, 0.0 }
 0x215   :  { %v1355_v61 = vpop.f32.mrf.mxu1 }
 0x216   :  { %v439_v63 = vadd.f32 %v1355_v61, %v1673_v57  ;;  %v507_v1 = vmul.f32 %v1680_v62, %v428_v59  ;;  %vm490_vm1 = vcmp.gt.f32.partialorder %v428_v59, 0.0  ;;  %v525_v12 = vsel %vm492_vm2, %v436_v60, %v509_v4  ;;  %v1481_v4 = vld [vmem:[#allocation4] sm:$0xff]  }
 0x217   :  { %v430_v0 = vpop.f32.mrf.mxu1  ;;  %1416 = vmatprep.mubr.bf16.mxu1 %v1481_v4 }
 0x218   :  { %vm493_vm0 = vcmp.gt.f32.partialorder %v439_v63, 0.0  ;;  %v510_v2 = vmul.f32 %v1680_v62, %v439_v63  ;;  %v431_v3 = vadd.f32 %v1673_v57, %v430_v0  ;;  %v523_v10 = vsel %vm490_vm1, %v428_v59, %v507_v1 }
 0x219   :  { %v1358_v5 = vpop.f32.mrf.mxu1 }
 0x21a   :  { %vm491_vm3 = vcmp.gt.f32.partialorder %v431_v3, 0.0  ;;  %v508_v6 = vmul.f32 %v1680_v62, %v431_v3  ;;  %v526_v7 = vsel %vm493_vm0, %v439_v63, %v510_v2  ;;  %v452_v13 = vadd.f32 %v1358_v5, %v1673_v57 }
 0x21b   :  { %v443_v8 = vpop.f32.mrf.mxu1  ;;  %v540_v16 = vpack.c.bf16 %v526_v7, %v525_v12 }
 0x21c   :  { %v444_v9 = vadd.f32 %v1673_v57, %v443_v8  ;;  %v524_v11 = vsel %vm491_vm3, %v431_v3, %v508_v6  ;;  %v513_v22 = vmul.f32 %v1680_v62, %v452_v13  ;;  %vm496_vm6 = vcmp.gt.f32.partialorder %v452_v13, 0.0 }
 0x21d   :  { %v1359_v14 = vpop.f32.mrf.mxu1  ;;  %v539_v15 = vpack.c.bf16 %v524_v11, %v523_v10 }
 0x21e   :  { %v455_v17 = vadd.f32 %v1359_v14, %v1673_v57  ;;  %v511_v19 = vmul.f32 %v1680_v62, %v444_v9  ;;  %vm494_vm5 = vcmp.gt.f32.partialorder %v444_v9, 0.0  ;;  %v529_v33 = vsel %vm496_vm6, %v452_v13, %v513_v22 }
 0x21f   :  { %v446_v18 = vpop.f32.mrf.mxu1  ;;  %1384 = vmatprep.mubr.bf16.mxu0 %v539_v15 }
 0x220   :  { %vm497_vm4 = vcmp.gt.f32.partialorder %v455_v17, 0.0  ;;  %v514_v20 = vmul.f32 %v1680_v62, %v455_v17  ;;  %v447_v21 = vadd.f32 %v1673_v57, %v446_v18  ;;  %1385 = vmatmul.mubr.bf16.vlgmr.msra.gmra.mxu0 %v540_v16  ;;  %v527_v28 = vsel %vm494_vm5, %v444_v9, %v511_v19 }
 0x221   :  { %v1362_v23 = vpop.f32.mrf.mxu1 }
 0x222   :  { %vm495_vm7 = vcmp.gt.f32.partialorder %v447_v21, 0.0  ;;  %v512_v24 = vmul.f32 %v1680_v62, %v447_v21  ;;  %v530_v26 = vsel %vm497_vm4, %v455_v17, %v514_v20  ;;  %v468_v30 = vadd.f32 %v1362_v23, %v1673_v57 }
 0x223   :  { %v459_v25 = vpop.f32.mrf.mxu1  ;;  %v542_v35 = vpack.c.bf16 %v530_v26, %v529_v33 }
 0x224   :  { %v460_v27 = vadd.f32 %v1673_v57, %v459_v25  ;;  %v528_v29 = vsel %vm495_vm7, %v447_v21, %v512_v24  ;;  %v517_v40 = vmul.f32 %v1680_v62, %v468_v30  ;;  %vm500_vm10 = vcmp.gt.f32.partialorder %v468_v30, 0.0 }
 0x225   :  { %v1363_v31 = vpop.f32.mrf.mxu1  ;;  %v541_v32 = vpack.c.bf16 %v528_v29, %v527_v28 }
 0x226   :  { %v471_v34 = vadd.f32 %v1363_v31, %v1673_v57  ;;  %v515_v37 = vmul.f32 %v1680_v62, %v460_v27  ;;  %vm498_vm9 = vcmp.gt.f32.partialorder %v460_v27, 0.0  ;;  %v533_v51 = vsel %vm500_vm10, %v468_v30, %v517_v40  ;;  %v1486_v40 = vld [vmem:[#allocation4 + $0x28] sm:$0xff]  }
 0x227   :  { %v462_v36 = vpop.f32.mrf.mxu1  ;;  %1388 = vmatprep.mubr.bf16.mxu0 %v541_v32 }
 0x228   :  { %vm501_vm8 = vcmp.gt.f32.partialorder %v471_v34, 0.0  ;;  %v518_v38 = vmul.f32 %v1680_v62, %v471_v34  ;;  %v463_v39 = vadd.f32 %v1673_v57, %v462_v36  ;;  %1389 = vmatmul.mubr.bf16.gmra.mxu0 %v542_v35  ;;  %v531_v46 = vsel %vm498_vm9, %v460_v27, %v515_v37  ;;  %v1482_v36 = vld [vmem:[#allocation4 + $0x8] sm:$0xff]   ;;  %v1483_v37 = vld [vmem:[#allocation4 + $0x10] sm:$0xff]  }
 0x229   :  { %v1366_v41 = vpop.f32.mrf.mxu1 }
 0x22a   :  { %vm499_vm11 = vcmp.gt.f32.partialorder %v463_v39, 0.0  ;;  %v516_v42 = vmul.f32 %v1680_v62, %v463_v39  ;;  %v534_v44 = vsel %vm501_vm8, %v471_v34, %v518_v38  ;;  %v484_v48 = vadd.f32 %v1366_v41, %v1673_v57  ;;  %v1484_v38 = vld [vmem:[#allocation4 + $0x18] sm:$0xff]   ;;  %v1487_v41 = vld [vmem:[#allocation4 + $0x30] sm:$0xff]  }
 0x22b   :  { %v475_v43 = vpop.f32.mrf.mxu1  ;;  %v544_v53 = vpack.c.bf16 %v534_v44, %v533_v51 }
 0x22c   :  { %v476_v45 = vadd.f32 %v1673_v57, %v475_v43  ;;  %v532_v47 = vsel %vm499_vm11, %v463_v39, %v516_v42  ;;  %v521_v59 = vmul.f32 %v1680_v62, %v484_v48  ;;  %vm504_vm14 = vcmp.gt.f32.partialorder %v484_v48, 0.0  ;;  %v1485_v39 = vld [vmem:[#allocation4 + $0x20] sm:$0xff]   ;;  %v1488_v42 = vld [vmem:[#allocation4 + $0x38] sm:$0xff]  }
 0x22d   :  { %v1367_v49 = vpop.f32.mrf.mxu1  ;;  %v543_v50 = vpack.c.bf16 %v532_v47, %v531_v46  ;;  %v1715_v43 = vld [vmem:[%s1758_s6] ss:$0 sm:$0xff]  ;;  %s1603_s6 = smov [#allocation12]  }
 0x22e   :  { %v487_v52 = vadd.f32 %v1367_v49, %v1673_v57  ;;  %v519_v55 = vmul.f32 %v1680_v62, %v476_v45  ;;  %vm502_vm13 = vcmp.gt.f32.partialorder %v476_v45, 0.0  ;;  %v537_v2 = vsel %vm504_vm14, %v484_v48, %v521_v59  ;;  %s1095_s23 = sshll.u32 %s1603_s6, 4  ;;  %s1096_s23 = int_to_ptr.vmem [resolvable:$true] %s1095_s23 }
 0x22f   :  { %v478_v54 = vpop.f32.mrf.mxu1  ;;  %1392 = vmatprep.mubr.bf16.mxu0 %v543_v50  ;;  %s1569_s24 = scalar_lea.vmem %s1096_s23, 2048  ;;  %p1574_p7 = scmp.lt.s32.totalorder %s1096_s23, %s1096_s23 }
 0x230   :  { %vm505_vm12 = vcmp.gt.f32.partialorder %v487_v52, 0.0  ;;  %v522_v56 = vmul.f32 %v1680_v62, %v487_v52  ;;  %v479_v58 = vadd.f32 %v1673_v57, %v478_v54  ;;  %1393 = vmatmul.mubr.bf16.gmra.mxu0 %v544_v53  ;;  %v535_v63 = vsel %vm502_vm13, %v476_v45, %v519_v55  ;;  %p1570_p6 = scmp.ne.s32.totalorder %s1096_s23, %s1569_s24  ;;  %p1575_p8 = scmp.lt.s32.totalorder %s1569_s24, %s1569_s24 }
 0x232   :  { %vm503_vm15 = vcmp.gt.f32.partialorder %v479_v58, 0.0  ;;  %v520_v60 = vmul.f32 %v1680_v62, %v479_v58  ;;  %v538_v61 = vsel %vm505_vm12, %v487_v52, %v522_v56  ;;  %p1576_p9 = por %p1575_p8, %p1574_p7 }
 0x233   :  { %v546_v3 = vpack.c.bf16 %v538_v61, %v537_v2 }
 0x234   :  { %v536_v0 = vsel %vm503_vm15, %v479_v58, %v520_v60  ;;  %p1577_p10 = pnand %p1576_p9, %p1570_p6 }
 0x235   :  { %v545_v1 = vpack.c.bf16 %v536_v0, %v535_v63 }
 0x237   :  { %1396 = vmatprep.mubr.bf16.mxu0 %v545_v1 }
 0x238   :  { %1397 = vmatmul.mubr.bf16.gmra.mxu0 %v546_v3 }
 0x2e0   :  { %v1386_v5 = vpop.f32.mrf.mxu0 }
 0x2e2   :  { %v645_v57 = vpop.f32.mrf.mxu0 }
 0x2e4   :  { %v1387_v6 = vpop.f32.mrf.mxu0 }
 0x2e5   :  { %v1201_v7 = vpack.c.bf16 %v1387_v6, %v1386_v5 }
 0x2e6   :  { %v648_v8 = vpop.f32.mrf.mxu0 }
 0x2e7   :  { %1233 = vst [vmem:[#allocation2 + $0x8] sm:$0xff] %v1201_v7   ;;  %v1196_v9 = vpack.c.bf16 %v648_v8, %v645_v57 }
 0x2e8   :  { %v1390_v10 = vpop.f32.mrf.mxu0 }
 0x2e9   :  { %1197 = vst [vmem:[#allocation2] sm:$0xff] %v1196_v9  }
 0x2ea   :  { %v661_v11 = vpop.f32.mrf.mxu0 }
 0x2ec   :  { %v1391_v12 = vpop.f32.mrf.mxu0 }
 0x2ed   :  { %v1211_v13 = vpack.c.bf16 %v1391_v12, %v1390_v10 }
 0x2ee   :  { %v664_v14 = vpop.f32.mrf.mxu0  ;;  %v1479_v34 = vld [vmem:[#allocation2 + $0x8] sm:$0xff]  }
 0x2ef   :  { %1235 = vst [vmem:[#allocation2 + $0x18] sm:$0xff] %v1211_v13   ;;  %v1206_v15 = vpack.c.bf16 %v664_v14, %v661_v11 }
 0x2f0   :  { %v1394_v16 = vpop.f32.mrf.mxu0  ;;  %v1480_v35 = vld [vmem:[#allocation2] sm:$0xff]  }
 0x2f1   :  { %1234 = vst [vmem:[#allocation2 + $0x10] sm:$0xff] %v1206_v15  }
 0x2f2   :  { %v677_v17 = vpop.f32.mrf.mxu0 }
 0x2f4   :  { %v1395_v18 = vpop.f32.mrf.mxu0 }
 0x2f5   :  { %v1221_v19 = vpack.c.bf16 %v1395_v18, %v1394_v16 }
 0x2f6   :  { %v680_v20 = vpop.f32.mrf.mxu0  ;;  %v1477_v32 = vld [vmem:[#allocation2 + $0x18] sm:$0xff]  }
 0x2f7   :  { %1237 = vst [vmem:[#allocation2 + $0x28] sm:$0xff] %v1221_v19   ;;  %v1216_v21 = vpack.c.bf16 %v680_v20, %v677_v17 }
 0x2f8   :  { %v1398_v22 = vpop.f32.mrf.mxu0  ;;  %v1478_v33 = vld [vmem:[#allocation2 + $0x10] sm:$0xff]  }
 0x2f9   :  { %1236 = vst [vmem:[#allocation2 + $0x20] sm:$0xff] %v1216_v21  }
 0x2fa   :  { %v693_v23 = vpop.f32.mrf.mxu0 }
 0x2fc   :  { %v1399_v24 = vpop.f32.mrf.mxu0 }
 0x2fd   :  { %v1231_v25 = vpack.c.bf16 %v1399_v24, %v1398_v22 }
 0x2fe   :  { %v696_v26 = vpop.f32.mrf.mxu0  ;;  %v1475_v30 = vld [vmem:[#allocation2 + $0x28] sm:$0xff]  }
 0x2ff   :  { %1239 = vst [vmem:[#allocation2 + $0x38] sm:$0xff] %v1231_v25   ;;  %v1226_v27 = vpack.c.bf16 %v696_v26, %v693_v23 }
 0x300   :  { %v1476_v31 = vld [vmem:[#allocation2 + $0x20] sm:$0xff]  }
 0x301   :  { %1238 = vst [vmem:[#allocation2 + $0x30] sm:$0xff] %v1226_v27  }
 0x306   :  { %v1473_v28 = vld [vmem:[#allocation2 + $0x38] sm:$0xff]  }
 0x307   :  { %1400 = vmatprep.subr.bf16.mxu1 %v1473_v28 }
 0x308   :  { %v1474_v29 = vld [vmem:[#allocation2 + $0x30] sm:$0xff]   ;;  %1401 = vmatpush3.bf16.msra.mxu1 %v1473_v28 }
 0x309   :  { %1402 = vmatprep.subr.bf16.mxu1 %v1474_v29 }
 0x30c   :  { %1403 = vmatpush3.bf16.msra.mxu1 %v1474_v29 }
 0x30d   :  { %1404 = vmatprep.subr.bf16.mxu1 %v1475_v30 }
 0x310   :  { %1405 = vmatpush3.bf16.msra.mxu1 %v1475_v30 }
 0x311   :  { %1406 = vmatprep.subr.bf16.mxu1 %v1476_v31 }
 0x314   :  { %1407 = vmatpush3.bf16.msra.mxu1 %v1476_v31 }
 0x315   :  { %1408 = vmatprep.subr.bf16.mxu1 %v1477_v32 }
 0x318   :  { %1409 = vmatpush3.bf16.msra.mxu1 %v1477_v32 }
 0x319   :  { %1410 = vmatprep.subr.bf16.mxu1 %v1478_v33 }
 0x31c   :  { %1411 = vmatpush3.bf16.msra.mxu1 %v1478_v33 }
 0x31d   :  { %1412 = vmatprep.subr.bf16.mxu1 %v1479_v34 }
 0x320   :  { %1413 = vmatpush3.bf16.msra.mxu1 %v1479_v34 }
 0x321   :  { %1414 = vmatprep.subr.bf16.mxu1 %v1480_v35 }
 0x324   :  { %1415 = vmatpush3.bf16.msra.mxu1 %v1480_v35 }
 0x327   :  { %1417 = vmatmul.mubr.bf16.vlgmr.msra.gmra.mxu1 %v1482_v36 }
 0x328   :  { %1420 = vmatprep.mubr.bf16.mxu1 %v1483_v37 }
 0x32f   :  { %1421 = vmatmul.mubr.bf16.gmra.mxu1 %v1484_v38 }
 0x330   :  { %1424 = vmatprep.mubr.bf16.mxu1 %v1485_v39 }
 0x337   :  { %1425 = vmatmul.mubr.bf16.gmra.mxu1 %v1486_v40 }
 0x338   :  { %1428 = vmatprep.mubr.bf16.mxu1 %v1487_v41 }
 0x33f   :  { %1429 = vmatmul.mubr.bf16.gmra.mxu1 %v1488_v42 }
 0x3e7   :  { %v1418_v44 = vpop.f32.mrf.mxu1 }
 0x3e8   :  { %v971_v45 = vadd.f32 %v1418_v44, %v1715_v43 }
 0x3e9   :  { %v962_v46 = vpop.f32.mrf.mxu1 }
 0x3ea   :  { %vm1027_vm0 = vcmp.gt.f32.partialorder %v971_v45, 0.0  ;;  %v1044_v47 = vmul.f32 %v971_v45, %v1680_v62  ;;  %v963_v48 = vadd.f32 %v1715_v43, %v962_v46 }
 0x3eb   :  { %v1419_v49 = vpop.f32.mrf.mxu1 }
 0x3ec   :  { %v1060_v50 = vsel %vm1027_vm0, %v971_v45, %v1044_v47  ;;  %vm1025_vm1 = vcmp.gt.f32.partialorder %v963_v48, 0.0  ;;  %v1042_v51 = vmul.f32 %v963_v48, %v1680_v62  ;;  %v974_v52 = vadd.f32 %v1419_v49, %v1715_v43 }
 0x3ed   :  { %1076 = vst [vmem:[#allocation12 + $0x10] sm:$0xff] %v1060_v50  ;;  %v965_v53 = vpop.f32.mrf.mxu1 }
 0x3ee   :  { %v1058_v54 = vsel %vm1025_vm1, %v963_v48, %v1042_v51  ;;  %vm1028_vm2 = vcmp.gt.f32.partialorder %v974_v52, 0.0  ;;  %v1045_v55 = vmul.f32 %v974_v52, %v1680_v62  ;;  %v966_v56 = vadd.f32 %v1715_v43, %v965_v53 }
 0x3ef   :  { %1074 = vst [vmem:[#allocation12] sm:$0xff] %v1058_v54  ;;  %v1422_v58 = vpop.f32.mrf.mxu1 }
 0x3f0   :  { %v1061_v59 = vsel %vm1028_vm2, %v974_v52, %v1045_v55  ;;  %vm1026_vm3 = vcmp.gt.f32.partialorder %v966_v56, 0.0  ;;  %v1043_v60 = vmul.f32 %v966_v56, %v1680_v62  ;;  %v987_v61 = vadd.f32 %v1422_v58, %v1715_v43 }
 0x3f1   :  { %1077 = vst [vmem:[#allocation12 + $0x18] sm:$0xff] %v1061_v59  ;;  %v978_v63 = vpop.f32.mrf.mxu1 }
 0x3f2   :  { %v1059_v0 = vsel %vm1026_vm3, %v966_v56, %v1043_v60  ;;  %vm1031_vm4 = vcmp.gt.f32.partialorder %v987_v61, 0.0  ;;  %v1048_v1 = vmul.f32 %v987_v61, %v1680_v62  ;;  %v979_v2 = vadd.f32 %v1715_v43, %v978_v63 }
 0x3f3   :  { %1075 = vst [vmem:[#allocation12 + $0x8] sm:$0xff] %v1059_v0  ;;  %v1423_v3 = vpop.f32.mrf.mxu1 }
 0x3f4   :  { %v1064_v4 = vsel %vm1031_vm4, %v987_v61, %v1048_v1  ;;  %vm1029_vm5 = vcmp.gt.f32.partialorder %v979_v2, 0.0  ;;  %v1046_v5 = vmul.f32 %v979_v2, %v1680_v62  ;;  %v990_v57 = vadd.f32 %v1423_v3, %v1715_v43 }
 0x3f5   :  { %1080 = vst [vmem:[#allocation12 + $0x30] sm:$0xff] %v1064_v4  ;;  %v981_v6 = vpop.f32.mrf.mxu1 }
 0x3f6   :  { %v1062_v7 = vsel %vm1029_vm5, %v979_v2, %v1046_v5  ;;  %vm1032_vm6 = vcmp.gt.f32.partialorder %v990_v57, 0.0  ;;  %v1049_v8 = vmul.f32 %v990_v57, %v1680_v62  ;;  %v982_v9 = vadd.f32 %v1715_v43, %v981_v6 }
 0x3f7   :  { %1078 = vst [vmem:[#allocation12 + $0x20] sm:$0xff] %v1062_v7  ;;  %v1426_v10 = vpop.f32.mrf.mxu1 }
 0x3f8   :  { %v1065_v11 = vsel %vm1032_vm6, %v990_v57, %v1049_v8  ;;  %vm1030_vm7 = vcmp.gt.f32.partialorder %v982_v9, 0.0  ;;  %v1047_v12 = vmul.f32 %v982_v9, %v1680_v62  ;;  %v1003_v13 = vadd.f32 %v1426_v10, %v1715_v43 }
 0x3f9   :  { %1081 = vst [vmem:[#allocation12 + $0x38] sm:$0xff] %v1065_v11  ;;  %v994_v14 = vpop.f32.mrf.mxu1 }
 0x3fa   :  { %v1063_v15 = vsel %vm1030_vm7, %v982_v9, %v1047_v12  ;;  %vm1035_vm8 = vcmp.gt.f32.partialorder %v1003_v13, 0.0  ;;  %v1052_v16 = vmul.f32 %v1003_v13, %v1680_v62  ;;  %v995_v17 = vadd.f32 %v1715_v43, %v994_v14 }
 0x3fb   :  { %1079 = vst [vmem:[#allocation12 + $0x28] sm:$0xff] %v1063_v15  ;;  %v1427_v18 = vpop.f32.mrf.mxu1 }
 0x3fc   :  { %v1068_v19 = vsel %vm1035_vm8, %v1003_v13, %v1052_v16  ;;  %vm1033_vm9 = vcmp.gt.f32.partialorder %v995_v17, 0.0  ;;  %v1050_v20 = vmul.f32 %v995_v17, %v1680_v62  ;;  %v1006_v21 = vadd.f32 %v1427_v18, %v1715_v43 }
 0x3fd   :  { %1084 = vst [vmem:[#allocation12 + $0x50] sm:$0xff] %v1068_v19  ;;  %v997_v22 = vpop.f32.mrf.mxu1 }
 0x3fe   :  { %v1066_v23 = vsel %vm1033_vm9, %v995_v17, %v1050_v20  ;;  %vm1036_vm10 = vcmp.gt.f32.partialorder %v1006_v21, 0.0  ;;  %v1053_v24 = vmul.f32 %v1006_v21, %v1680_v62  ;;  %v998_v25 = vadd.f32 %v1715_v43, %v997_v22 }
 0x3ff   :  { %1082 = vst [vmem:[#allocation12 + $0x40] sm:$0xff] %v1066_v23  ;;  %v1430_v26 = vpop.f32.mrf.mxu1 }
 0x400   :  { %v1069_v27 = vsel %vm1036_vm10, %v1006_v21, %v1053_v24  ;;  %vm1034_vm11 = vcmp.gt.f32.partialorder %v998_v25, 0.0  ;;  %v1051_v28 = vmul.f32 %v998_v25, %v1680_v62  ;;  %v1019_v29 = vadd.f32 %v1430_v26, %v1715_v43 }
 0x401   :  { %1085 = vst [vmem:[#allocation12 + $0x58] sm:$0xff] %v1069_v27  ;;  %v1010_v30 = vpop.f32.mrf.mxu1 }
 0x402   :  { %v1067_v31 = vsel %vm1034_vm11, %v998_v25, %v1051_v28  ;;  %vm1039_vm12 = vcmp.gt.f32.partialorder %v1019_v29, 0.0  ;;  %v1056_v32 = vmul.f32 %v1019_v29, %v1680_v62  ;;  %v1011_v33 = vadd.f32 %v1715_v43, %v1010_v30 }
 0x403   :  { %1083 = vst [vmem:[#allocation12 + $0x48] sm:$0xff] %v1067_v31  ;;  %v1431_v34 = vpop.f32.mrf.mxu1 }
 0x404   :  { %v1072_v35 = vsel %vm1039_vm12, %v1019_v29, %v1056_v32  ;;  %vm1037_vm13 = vcmp.gt.f32.partialorder %v1011_v33, 0.0  ;;  %v1054_v36 = vmul.f32 %v1011_v33, %v1680_v62  ;;  %v1022_v37 = vadd.f32 %v1431_v34, %v1715_v43 }
 0x405   :  { %1088 = vst [vmem:[#allocation12 + $0x70] sm:$0xff] %v1072_v35  ;;  %v1013_v38 = vpop.f32.mrf.mxu1 }
 0x406   :  { %v1070_v39 = vsel %vm1037_vm13, %v1011_v33, %v1054_v36  ;;  %vm1040_vm14 = vcmp.gt.f32.partialorder %v1022_v37, 0.0  ;;  %v1057_v40 = vmul.f32 %v1022_v37, %v1680_v62  ;;  %v1014_v41 = vadd.f32 %v1715_v43, %v1013_v38 }
 0x407   :  { %1086 = vst [vmem:[#allocation12 + $0x60] sm:$0xff] %v1070_v39 }
 0x408   :  { %v1073_v42 = vsel %vm1040_vm14, %v1022_v37, %v1057_v40  ;;  %vm1038_vm15 = vcmp.gt.f32.partialorder %v1014_v41, 0.0  ;;  %v1055_v44 = vmul.f32 %v1014_v41, %v1680_v62 }
 0x409   :  { %1089 = vst [vmem:[#allocation12 + $0x78] sm:$0xff] %v1073_v42 }
 0x40a   :  { %v1071_v45 = vsel %vm1038_vm15, %v1014_v41, %v1055_v44 }
 0x40b   :  { %1087 = vst [vmem:[#allocation12 + $0x68] sm:$0xff] %v1071_v45 }
 0x40c   :  { %1580 = shalt.err (!%p1577_p10)
}
 0x40d   :  { %s1604_s25 = smov 128   ;;  %s1605_s26 = smov 8  }
 0x40e   :  { %1101 = dma.vmem_to_hbm [thread:$0]  %s1096_s23, 2048, %s1759_s7, [#allocation6], %s1604_s25, %s1604_s25, %s1605_s26  }
 0x40f   :  { %1595 = dma.done.wait [#allocation6], 2048  }
 0x410   :  { %1596 = vsyncadd [#allocation6], 4294965248 }
 0x411   :  { %1105 = vsyncpa [#allocation5], 1 }
 0x412   :  { %1106 = vsyncpa [#allocation8], 1 }
 0x413   :  { %1107 = vsyncpa [#allocation11], 1 }
 0x414   :  { %1108 = vsyncpa [#allocation6], 1 }

</bundles_post_ra>
